<compile_context>
chip_gen: v5e
topology: v5e:2x2
jax: 0.10.0
libtpu: 0.0.40
codegen_flags: <defaults>
</compile_context>

<pallas_src>
import functools

import jax
import jax.numpy as jnp
from jax.experimental import pallas as pl
from jax.experimental.pallas import tpu as pltpu


def _round_up(x, m):
    return -(-x // m) * m


def _mlp_kernel(dims, w_offs, b_offs, x_ref, p_ref, o_ref):
    """Fused MLP, computed transposed (features x rows).

    x_ref : (tile, d0)       input rows for this grid step
    p_ref : (Pr, Pc)         packed params: W_l^T row-blocks then bias columns
    o_ref : (d_last, tile)   lane-dense output block (rows map to lanes)
    """
    num_linear = len(dims) - 1
    h = x_ref[...]                                              # (tile, d0)
    for l in range(num_linear):
        d_in, d_out = dims[l], dims[l + 1]
        w_t = p_ref[w_offs[l]:w_offs[l] + d_out, 0:d_in]        # (d_out, d_in)
        b = p_ref[b_offs[l]:b_offs[l] + d_out, 0:1].astype(jnp.float32)  # (d_out, 1)
        if l == 0:
            # (d_out, d_in) x (tile, d_in)^T -> (d_out, tile): rhs-transposed matmul.
            y = jax.lax.dot_general(w_t, h, (((1,), (1,)), ((), ())),
                                    preferred_element_type=jnp.float32)
        else:
            # (d_out, d_in) @ (d_in, tile) -> (d_out, tile): standard matmul.
            y = jax.lax.dot_general(w_t, h, (((1,), (0,)), ((), ())),
                                    preferred_element_type=jnp.float32)
        y = y + b
        if l < num_linear - 1:
            h = jnp.maximum(y, 0.0).astype(w_t.dtype)           # ReLU on hidden layers
        else:
            o_ref[...] = y.astype(o_ref.dtype)                  # dense (d_out, tile) store


def _pack_params(params, dtype):
    """Pack all W^T blocks and bias columns into one (rows, width) array."""
    max_din = max(W.shape[0] for (W, _) in params)
    width = max(128, _round_up(max_din, 128))
    segs, w_offs, b_offs = [], [], []
    r = 0
    for (W, _) in params:                       # W^T blocks, rows 8-aligned
        d_in, d_out = W.shape
        h = _round_up(d_out, 8)
        w_offs.append(r)
        blk = jnp.zeros((h, width), dtype).at[:d_out, :d_in].set(W.T.astype(dtype))
        segs.append(blk)
        r += h
    for (W, b) in params:                       # bias columns (lane 0)
        d_out = W.shape[1]
        h = _round_up(d_out, 8)
        b_offs.append(r)
        blk = jnp.zeros((h, width), dtype).at[:d_out, 0].set(
            b.reshape(-1).astype(dtype))
        segs.append(blk)
        r += h
    return jnp.concatenate(segs, axis=0), tuple(w_offs), tuple(b_offs)


def _num_tensorcores():
    try:
        kind = jax.devices()[0].device_kind.lower()
    except Exception:
        return 1
    return 2 if "v7" in kind else 1


def _choose_tile(n_rows, tile_m, num_tc):
    """Row tile: big (amortize per-step overhead), multiple of 128 (lane-dense output),
    split into >= 2 balanced steps only when there are 2 TensorCores (v7x)."""
    tile_m = max(128, (tile_m // 128) * 128)
    per_core = -(-n_rows // max(1, num_tc))
    return min(tile_m, _round_up(per_core, 128))


def decoder_forward(x, params, *, tile_m=8192):
    """Fused MLP decoder forward.

    x: (N, input_dim) array (f32 or bf16 storage; f32 accumulation either way).
    params: list of (W, b) with W: (d_in, d_out), b: (1, d_out).
    Returns (N, output_dim) float32, matching the torch module's forward.
    """
    N, d0 = x.shape
    store_dtype = jnp.bfloat16 if x.dtype == jnp.bfloat16 else jnp.float32
    x = x.astype(store_dtype)

    dims = [d0] + [W.shape[1] for (W, _) in params]
    out_dim = dims[-1]
    p_packed, w_offs, b_offs = _pack_params(params, store_dtype)

    tile = _choose_tile(N, tile_m, _num_tensorcores())
    n_steps = -(-N // tile)                    # ceil; ragged last block handled by Pallas
    out_w = n_steps * tile

    kernel = functools.partial(_mlp_kernel, tuple(dims), w_offs, b_offs)

    flops = 2 * out_w * sum(dims[i] * dims[i + 1] for i in range(len(dims) - 1))
    bytes_accessed = (x.size * x.dtype.itemsize
                      + p_packed.size * p_packed.dtype.itemsize
                      + out_w * out_dim * 4)
    cost = pl.CostEstimate(flops=flops, transcendentals=0,
                           bytes_accessed=bytes_accessed)

    out_t = pl.pallas_call(
        kernel,
        out_shape=jax.ShapeDtypeStruct((out_dim, out_w), jnp.float32),
        grid_spec=pltpu.PrefetchScalarGridSpec(
            num_scalar_prefetch=0,
            grid=(n_steps,),
            in_specs=[
                pl.BlockSpec((tile, d0), lambda i: (i, 0)),
                pl.BlockSpec(p_packed.shape, lambda i: (0, 0)),   # fetched once
            ],
            out_specs=pl.BlockSpec((out_dim, tile), lambda i: (0, i)),
        ),
        compiler_params=pltpu.CompilerParams(
            dimension_semantics=("parallel",),
            vmem_limit_bytes=32 * 1024 * 1024,
        ),
        cost_estimate=cost,
    )(x, p_packed)

    # (out_dim, out_w) -> (N, out_dim): one small fused slice+transpose.
    return out_t[:, :N].T


def init_decoder_params(key, input_dim, output_dim, num_hidden_layers, hidden_dim):
    """Deterministic synthetic init (shapes match the torch MLP)."""
    dims = [input_dim] + [hidden_dim] * num_hidden_layers + [output_dim]
    params = []
    for li in range(len(dims) - 1):
        key, kw, kb = jax.random.split(key, 3)
        d_in, d_out = dims[li], dims[li + 1]
        bound = 1.0 / jnp.sqrt(d_in)
        W = jax.random.uniform(kw, (d_in, d_out), jnp.float32, -bound, bound)
        b = jax.random.uniform(kb, (1, d_out), jnp.float32, -bound, bound)
        params.append((W, b))
    return params


def reference_forward(x, params):
    h = x.astype(jnp.float32)
    for li, (W, b) in enumerate(params):
        h = h @ W + b
        if li < len(params) - 1:
            h = jnp.maximum(h, 0.0)
    return h


if __name__ == "__main__":
    # Decoder kwargs (relu / MLP branch)
    coords_embed_dim = 32        # input_dim (positional_encoding, space_dim=2)
    num_bands = 8                # output_dim
    decoder_num_hidden_layers = 2
    decoder_hidden_dim = 64

    key = jax.random.PRNGKey(0)
    k_p, k_x1, k_x2 = jax.random.split(key, 3)

    params = init_decoder_params(
        k_p, coords_embed_dim, num_bands,
        decoder_num_hidden_layers, decoder_hidden_dim,
    )

    fwd = jax.jit(decoder_forward)

    # --- Test 1: f32, N multiple of 128 (single step on v5e/v6e, 2 steps on v7x). ---
    N1 = 256
    x1 = jax.random.normal(k_x1, (N1, coords_embed_dim), jnp.float32)
    out1 = jax.block_until_ready(fwd(x1, params))
    ref1 = reference_forward(x1, params)
    assert out1.shape == (N1, num_bands)
    assert jnp.allclose(out1, ref1, atol=1e-4, rtol=1e-4), "f32 mismatch vs reference"

    # --- Test 2: ragged N (not a multiple of 128/tile) -> partial last input block. ---
    N2 = 1000
    x2 = jax.random.normal(k_x2, (N2, coords_embed_dim), jnp.float32)
    out2 = jax.block_until_ready(decoder_forward(x2, params, tile_m=512))
    ref2 = reference_forward(x2, params)
    assert out2.shape == (N2, num_bands)
    assert jnp.allclose(out2, ref2, atol=1e-4, rtol=1e-4), "ragged-N mismatch"

    # --- Test 3: bf16 storage for x / weights, f32 accumulation (v6e/v7x path). ---
    out3 = jax.block_until_ready(decoder_forward(x1.astype(jnp.bfloat16), params))
    assert out3.shape == (N1, num_bands)
    assert bool(jnp.all(jnp.isfinite(out3)))
    assert float(jnp.max(jnp.abs(out3 - ref1))) < 0.2, "bf16 path diverged"

    print("KERNEL_OK")
</pallas_src>

<mosaic_0001>
module attributes {stable_mosaic.version = 11 : i64} {
  func.func @_mlp_kernel(%arg0: i32, %arg1: memref<256x32xf32, #tpu.memory_space<vmem>>, %arg2: memref<272x128xf32, #tpu.memory_space<vmem>>, %arg3: memref<8x256xf32, #tpu.memory_space<vmem>>) attributes {dimension_semantics = [#tpu.dimension_semantics<parallel>], iteration_bounds = array<i64: 1>, scalar_prefetch = 0 : i64, scratch_operands = 0 : i64, tpu.core_type = #tpu.core_type<tc>, window_params = [{transform_indices = @transform_0, window_bounds = array<i64: 256, 32>}, {pipeline_mode = #tpu.pipeline_mode<synchronous>, transform_indices = @transform_1, window_bounds = array<i64: 272, 128>}, {transform_indices = @transform_2, window_bounds = array<i64: 8, 256>}]} {
    %c0 = arith.constant 0 : index
    %c0_0 = arith.constant 0 : index
    %0 = vector.load %arg1[%c0, %c0_0] : memref<256x32xf32, #tpu.memory_space<vmem>>, vector<256x32xf32>
    %c0_1 = arith.constant 0 : index
    %c0_2 = arith.constant 0 : index
    %1 = vector.load %arg2[%c0_1, %c0_2] : memref<272x128xf32, #tpu.memory_space<vmem>>, vector<64x32xf32>
    %c136 = arith.constant 136 : index
    %c0_3 = arith.constant 0 : index
    %2 = vector.load %arg2[%c136, %c0_3] : memref<272x128xf32, #tpu.memory_space<vmem>>, vector<64x1xf32>
    %cst = arith.constant dense<0.000000e+00> : vector<64x256xf32>
    %3 = tpu.matmul %1, %0, %cst {dimension_numbers = #tpu.dot_dimension_numbers<[1], [1], [0], [0], [0, 0, 1, 0], [], []>} : vector<64x32xf32>, vector<256x32xf32>, vector<64x256xf32> -> vector<64x256xf32>
    %4 = vector.broadcast %2 : vector<64x1xf32> to vector<64x256xf32>
    %5 = arith.addf %3, %4 : vector<64x256xf32>
    %cst_4 = arith.constant 0.000000e+00 : f32
    %6 = vector.broadcast %cst_4 : f32 to vector<64x256xf32>
    %7 = arith.maximumf %5, %6 : vector<64x256xf32>
    %c64 = arith.constant 64 : index
    %c0_5 = arith.constant 0 : index
    %8 = vector.load %arg2[%c64, %c0_5] : memref<272x128xf32, #tpu.memory_space<vmem>>, vector<64x64xf32>
    %c200 = arith.constant 200 : index
    %c0_6 = arith.constant 0 : index
    %9 = vector.load %arg2[%c200, %c0_6] : memref<272x128xf32, #tpu.memory_space<vmem>>, vector<64x1xf32>
    %cst_7 = arith.constant dense<0.000000e+00> : vector<64x256xf32>
    %10 = tpu.matmul %8, %7, %cst_7 {dimension_numbers = #tpu.dot_dimension_numbers<[1], [0], [0], [1], [0, 0, 1, 1], [], []>} : vector<64x64xf32>, vector<64x256xf32>, vector<64x256xf32> -> vector<64x256xf32>
    %11 = vector.broadcast %9 : vector<64x1xf32> to vector<64x256xf32>
    %12 = arith.addf %10, %11 : vector<64x256xf32>
    %cst_8 = arith.constant 0.000000e+00 : f32
    %13 = vector.broadcast %cst_8 : f32 to vector<64x256xf32>
    %14 = arith.maximumf %12, %13 : vector<64x256xf32>
    %c128 = arith.constant 128 : index
    %c0_9 = arith.constant 0 : index
    %15 = vector.load %arg2[%c128, %c0_9] : memref<272x128xf32, #tpu.memory_space<vmem>>, vector<8x64xf32>
    %c264 = arith.constant 264 : index
    %c0_10 = arith.constant 0 : index
    %16 = vector.load %arg2[%c264, %c0_10] : memref<272x128xf32, #tpu.memory_space<vmem>>, vector<8x1xf32>
    %cst_11 = arith.constant dense<0.000000e+00> : vector<8x256xf32>
    %17 = tpu.matmul %15, %14, %cst_11 {dimension_numbers = #tpu.dot_dimension_numbers<[1], [0], [0], [1], [0, 0, 1, 1], [], []>} : vector<8x64xf32>, vector<64x256xf32>, vector<8x256xf32> -> vector<8x256xf32>
    %18 = vector.broadcast %16 : vector<8x1xf32> to vector<8x256xf32>
    %19 = arith.addf %17, %18 : vector<8x256xf32>
    %c0_12 = arith.constant 0 : index
    %c0_13 = arith.constant 0 : index
    %20 = vector.load %arg3[%c0_12, %c0_13] : memref<8x256xf32, #tpu.memory_space<vmem>>, vector<8x256xf32>
    tpu.vector_store %arg3[%c0_12, %c0_13], %19 {strides = array<i32>} : memref<8x256xf32, #tpu.memory_space<vmem>>, vector<8x256xf32>,
    return
  }
  func.func @transform_0(%arg0: i32) -> (i32, i32) {
    %c0_i32 = arith.constant 0 : i32
    %c0_i32_0 = arith.constant 0 : i32
    return %arg0, %c0_i32 : i32, i32
  }
  func.func @transform_1(%arg0: i32) -> (i32, i32) {
    %c0_i32 = arith.constant 0 : i32
    %c0_i32_0 = arith.constant 0 : i32
    %c0_i32_1 = arith.constant 0 : i32
    return %c0_i32, %c0_i32_0 : i32, i32
  }
  func.func @transform_2(%arg0: i32) -> (i32, i32) {
    %c0_i32 = arith.constant 0 : i32
    %c0_i32_0 = arith.constant 0 : i32
    return %c0_i32, %arg0 : i32, i32
  }
}

</mosaic_0001>

<bundles_post_ra>
// kernel: decoder_forward.1
= control target key start
LH: loop header
LB: loop body
LE: loop exit
PB: predicated region body
PF: predicated region fallthrough
CT: control target
= control target key end

     0   :  { %vm100_vm0 = vcmask 261120   ;;  %s947_s0 = inlined_call_operand.vmem [shape: f32[256,32], index: 0, kind: input, shape index: {}]   ;;  %s948_s1 = inlined_call_operand.vmem [shape: f32[272,128], index: 1, kind: input, shape index: {}]   ;;  %s949_s2 = inlined_call_operand.hbm [shape: f32[8,256], index: 2, kind: output, shape index: {}]  }
   0x1   :  { %v27_v0 = vld [vmem:[%s947_s0 + $0x78] sm:$0xff]  ;;  %v26_v2 = vld [vmem:[%s947_s0 + $0x70] sm:$0xff]  ;;  %v25_v4 = vld [vmem:[%s947_s0 + $0x68] sm:$0xff] }
   0x2   :  { %v43_v1 = vld [vmem:[%s947_s0 + $0xf8] sm:$0xff]  ;;  %566 = vmatpush.xpose.msk.msra.mxu0 %vm100_vm0, %v27_v0  ;;  %v42_v3 = vld [vmem:[%s947_s0 + $0xf0] sm:$0xff]  ;;  %v41_v5 = vld [vmem:[%s947_s0 + $0xe8] sm:$0xff] }
   0x3   :  { %590 = vmatpush.xpose.msk.msra.mxu1 %vm100_vm0, %v43_v1 }
   0x6   :  { %567 = vmatpush.xpose.msk.msra.mxu0 %vm100_vm0, %v26_v2 }
   0x7   :  { %591 = vmatpush.xpose.msk.msra.mxu1 %vm100_vm0, %v42_v3 }
   0x8   :  { %7 = vsyncpa [#allocation3], 0  ;;  %v24_v6 = vld [vmem:[%s947_s0 + $0x60] sm:$0xff]  ;;  %v23_v8 = vld [vmem:[%s947_s0 + $0x58] sm:$0xff]  ;;  %v663_v17 = vmov 0   ;;  %vm375_vm1 = vcmask 523264  }
   0x9   :  { %v40_v7 = vld [vmem:[%s947_s0 + $0xe0] sm:$0xff]  ;;  %v39_v9 = vld [vmem:[%s947_s0 + $0xd8] sm:$0xff]  ;;  %v22_v10 = vld [vmem:[%s947_s0 + $0x50] sm:$0xff]  ;;  %635 = vset.pattern.permute.xlu1 %v663_v17  ;;  %634 = vset.pattern.permute.xlu0 %v663_v17  ;;  %s664_s27 = smov [#allocation2]   ;;  %s557_s3 = sshll.u32 %s949_s2, 4  ;;  %s558_s3 = int_to_ptr.hbm [resolvable:$true] %s557_s3 }
   0xa   :  { %568 = vmatpush.xpose.msk.msra.mxu0 %vm100_vm0, %v25_v4  ;;  %v38_v11 = vld [vmem:[%s947_s0 + $0xd0] sm:$0xff]  ;;  %v21_v12 = vld [vmem:[%s947_s0 + $0x48] sm:$0xff]  ;;  %v20_v15 = vld [vmem:[%s947_s0 + $0x40] sm:$0xff]  ;;  %636 = vset.pattern.permute.xlu2 %v663_v17  ;;  %s555_s28 = sshll.u32 %s664_s27, 4  ;;  %s556_s28 = int_to_ptr.vmem [resolvable:$true] %s555_s28 }
   0xb   :  { %592 = vmatpush.xpose.msk.msra.mxu1 %vm100_vm0, %v41_v5  ;;  %v37_v13 = vld [vmem:[%s947_s0 + $0xc8] sm:$0xff]  ;;  %v57_v14 = vld [vmem:[%s948_s1 + $0xb0] sm:$0xff]  ;;  %v36_v16 = vld [vmem:[%s947_s0 + $0xc0] sm:$0xff] }
   0xc   :  { %87 = vperm.xlu1 %635, %v57_v14   ;;  %v19_v18 = vld [vmem:[%s947_s0 + $0x38] sm:$0xff]  ;;  %v59_v20 = vld [vmem:[%s948_s1 + $0xc0] sm:$0xff]  ;;  %v56_v21 = vld [vmem:[%s948_s1 + $0xa8] sm:$0xff] }
   0xd   :  { %v35_v19 = vld [vmem:[%s947_s0 + $0xb8] sm:$0xff]  ;;  %v18_v22 = vld [vmem:[%s947_s0 + $0x30] sm:$0xff]  ;;  %97 = vperm.xlu0 %634, %v59_v20   ;;  %v17_v24 = vld [vmem:[%s947_s0 + $0x28] sm:$0xff] }
   0xe   :  { %569 = vmatpush.xpose.msk.msra.mxu0 %vm100_vm0, %v24_v6  ;;  %v34_v23 = vld [vmem:[%s947_s0 + $0xb0] sm:$0xff]  ;;  %v33_v25 = vld [vmem:[%s947_s0 + $0xa8] sm:$0xff]  ;;  %v58_v26 = vld [vmem:[%s948_s1 + $0xb8] sm:$0xff] }
   0xf   :  { %593 = vmatpush.xpose.msk.msra.mxu1 %vm100_vm0, %v40_v7  ;;  %v52_v27 = vld [vmem:[%s948_s1 + $0x88] sm:$0xff]  ;;  %v16_v28 = vld [vmem:[%s947_s0 + $0x20] sm:$0xff]  ;;  %v15_v30 = vld [vmem:[%s947_s0 + $0x18] sm:$0xff] }
  0x10   :  { %v32_v29 = vld [vmem:[%s947_s0 + $0xa0] sm:$0xff]  ;;  %v31_v31 = vld [vmem:[%s947_s0 + $0x98] sm:$0xff]  ;;  %v53_v32 = vld [vmem:[%s948_s1 + $0x90] sm:$0xff] }
  0x11   :  { %v14_v33 = vld [vmem:[%s947_s0 + $0x10] sm:$0xff]  ;;  %v13_v35 = vld [vmem:[%s947_s0 + $0x8] sm:$0xff]  ;;  %v12_v37 = vld [vmem:[%s947_s0] sm:$0xff] }
  0x12   :  { %570 = vmatpush.xpose.msk.msra.mxu0 %vm100_vm0, %v23_v8  ;;  %v30_v34 = vld [vmem:[%s947_s0 + $0x90] sm:$0xff]  ;;  %v29_v36 = vld [vmem:[%s947_s0 + $0x88] sm:$0xff]  ;;  %v28_v38 = vld [vmem:[%s947_s0 + $0x80] sm:$0xff] }
  0x13   :  { %594 = vmatpush.xpose.msk.msra.mxu1 %vm100_vm0, %v39_v9  ;;  %v44_v39 = vld [vmem:[%s948_s1] sm:$0xff]  ;;  %v45_v40 = vld [vmem:[%s948_s1 + $0x8] sm:$0xff]  ;;  %v333_v42 = vld [vmem:[%s948_s1 + $0xf8] sm:$0xff] }
  0x14   :  { %82 = vperm.xlu1 %635, %v56_v21   ;;  %v55_v41 = vld [vmem:[%s948_s1 + $0xa0] sm:$0xff]  ;;  %v46_v43 = vld [vmem:[%s948_s1 + $0x10] sm:$0xff]  ;;  %v54_v45 = vld [vmem:[%s948_s1 + $0x98] sm:$0xff] }
  0x15   :  { %92 = vperm.xlu0 %634, %v58_v26   ;;  %77 = vperm.xlu2 %636, %v55_v41   ;;  %v332_v44 = vld [vmem:[%s948_s1 + $0xf0] sm:$0xff]  ;;  %v330_v46 = vld [vmem:[%s948_s1 + $0xe0] sm:$0xff]  ;;  %v47_v47 = vld [vmem:[%s948_s1 + $0x18] sm:$0xff] }
  0x16   :  { %571 = vmatpush.xpose.msk.msra.mxu0 %vm100_vm0, %v22_v10  ;;  %v329_v48 = vld [vmem:[%s948_s1 + $0xd8] sm:$0xff]  ;;  %v327_v49 = vld [vmem:[%s948_s1 + $0xc8] sm:$0xff]  ;;  %v334_v50 = vld [vmem:[%s948_s1 + $0x100] sm:$0xff] }
  0x17   :  { %595 = vmatpush.xpose.msk.msra.mxu1 %vm100_vm0, %v38_v11  ;;  %v48_v51 = vld [vmem:[%s948_s1 + $0x20] sm:$0xff]  ;;  %v499_v52 = vld [vmem:[%s948_s1 + $0x108] sm:$0xff]  ;;  %v328_v55 = vld [vmem:[%s948_s1 + $0xd0] sm:$0xff] }
  0x18   :  { %v331_v53 = vld [vmem:[%s948_s1 + $0xe8] sm:$0xff]  ;;  %v50_v56 = vld [vmem:[%s948_s1 + $0x30] sm:$0xff]  ;;  %v51_v57 = vld [vmem:[%s948_s1 + $0x38] sm:$0xff] }
  0x19   :  { %v49_v54 = vld [vmem:[%s948_s1 + $0x28] sm:$0xff] }
  0x1a   :  { %572 = vmatpush.xpose.msk.msra.mxu0 %vm100_vm0, %v21_v12 }
  0x1b   :  { %596 = vmatpush.xpose.msk.msra.mxu1 %vm100_vm0, %v37_v13 }
  0x1c   :  { %62 = vperm.xlu1 %635, %v52_v27  }
  0x1d   :  { %67 = vperm.xlu0 %634, %v53_v32   ;;  %72 = vperm.xlu2 %636, %v54_v45  }
  0x1e   :  { %573 = vmatpush.xpose.msk.msra.mxu0 %vm100_vm0, %v20_v15 }
  0x1f   :  { %597 = vmatpush.xpose.msk.msra.mxu1 %vm100_vm0, %v36_v16 }
  0x22   :  { %574 = vmatpush.xpose.msk.msra.mxu0 %vm100_vm0, %v19_v18 }
  0x23   :  { %598 = vmatpush.xpose.msk.msra.mxu1 %vm100_vm0, %v35_v19 }
  0x24   :  { %362 = vperm.xlu1 %635, %v332_v44  }
  0x25   :  { %367 = vperm.xlu0 %634, %v333_v42   ;;  %372 = vperm.xlu2 %636, %v334_v50   ;;  %v319_v50 = vld [vmem:[%s948_s1 + $0x40] sm:$0xff] }
  0x26   :  { %575 = vmatpush.xpose.msk.msra.mxu0 %vm100_vm0, %v18_v22 }
  0x27   :  { %599 = vmatpush.xpose.msk.msra.mxu1 %vm100_vm0, %v34_v23 }
  0x2a   :  { %576 = vmatpush.xpose.msk.msra.mxu0 %vm100_vm0, %v17_v24 }
  0x2b   :  { %600 = vmatpush.xpose.msk.msra.mxu1 %vm100_vm0, %v33_v25 }
  0x2c   :  { %347 = vperm.xlu1 %635, %v329_v48  }
  0x2d   :  { %352 = vperm.xlu0 %634, %v330_v46   ;;  %357 = vperm.xlu2 %636, %v331_v53   ;;  %v322_v53 = vld [vmem:[%s948_s1 + $0x58] sm:$0xff] }
  0x2e   :  { %577 = vmatpush.xpose.msk.msra.mxu0 %vm100_vm0, %v16_v28 }
  0x2f   :  { %601 = vmatpush.xpose.msk.msra.mxu1 %vm100_vm0, %v32_v29 }
  0x32   :  { %578 = vmatpush.xpose.msk.msra.mxu0 %vm100_vm0, %v15_v30 }
  0x33   :  { %602 = vmatpush.xpose.msk.msra.mxu1 %vm100_vm0, %v31_v31 }
  0x34   :  { %502 = vperm.xlu1 %635, %v499_v52   ;;  %v321_v52 = vld [vmem:[%s948_s1 + $0x50] sm:$0xff] }
  0x35   :  { %337 = vperm.xlu0 %634, %v327_v49   ;;  %342 = vperm.xlu2 %636, %v328_v55   ;;  %v324_v55 = vld [vmem:[%s948_s1 + $0x68] sm:$0xff] }
  0x36   :  { %579 = vmatpush.xpose.msk.msra.mxu0 %vm100_vm0, %v14_v33 }
  0x37   :  { %603 = vmatpush.xpose.msk.msra.mxu1 %vm100_vm0, %v30_v34 }
  0x3a   :  { %580 = vmatpush.xpose.msk.msra.mxu0 %vm100_vm0, %v13_v35 }
  0x3b   :  { %604 = vmatpush.xpose.msk.msra.mxu1 %vm100_vm0, %v29_v36 }
  0x3e   :  { %581 = vmatpush.xpose.msk.msra.mxu0 %vm100_vm0, %v12_v37 }
  0x3f   :  { %605 = vmatpush.xpose.msk.msra.mxu1 %vm100_vm0, %v28_v38 }
  0x41   :  { %582 = vmatmul.msk.f32.vlgmr.msra.gmra.mxu0 %vm100_vm0, %v44_v39 }
  0x42   :  { %606 = vmatmul.msk.f32.vlgmr.msra.gmra.mxu1 %vm100_vm0, %v44_v39 }
  0x49   :  { %583 = vmatmul.msk.f32.gmra.mxu0 %vm100_vm0, %v45_v40 }
  0x4a   :  { %607 = vmatmul.msk.f32.gmra.mxu1 %vm100_vm0, %v45_v40 }
  0x51   :  { %584 = vmatmul.msk.f32.gmra.mxu0 %vm100_vm0, %v46_v43 }
  0x52   :  { %608 = vmatmul.msk.f32.gmra.mxu1 %vm100_vm0, %v46_v43 }
  0x59   :  { %585 = vmatmul.msk.f32.gmra.mxu0 %vm100_vm0, %v47_v47 }
  0x5a   :  { %609 = vmatmul.msk.f32.gmra.mxu1 %vm100_vm0, %v47_v47 }
  0x61   :  { %586 = vmatmul.msk.f32.gmra.mxu0 %vm100_vm0, %v48_v51 }
  0x62   :  { %610 = vmatmul.msk.f32.gmra.mxu1 %vm100_vm0, %v48_v51  ;;  %v320_v51 = vld [vmem:[%s948_s1 + $0x48] sm:$0xff] }
  0x69   :  { %587 = vmatmul.msk.f32.gmra.mxu0 %vm100_vm0, %v49_v54 }
  0x6a   :  { %611 = vmatmul.msk.f32.gmra.mxu1 %vm100_vm0, %v49_v54  ;;  %v323_v54 = vld [vmem:[%s948_s1 + $0x60] sm:$0xff] }
  0x6f   :  { %v78_v10 = vpop.permute.xlu2 %77 }
  0x71   :  { %588 = vmatmul.msk.f32.gmra.mxu0 %vm100_vm0, %v50_v56 }
  0x72   :  { %612 = vmatmul.msk.f32.gmra.mxu1 %vm100_vm0, %v50_v56  ;;  %v325_v56 = vld [vmem:[%s948_s1 + $0x70] sm:$0xff] }
  0x77   :  { %v73_v27 = vpop.permute.xlu2 %72 }
  0x79   :  { %589 = vmatmul.msk.f32.gmra.mxu0 %vm100_vm0, %v51_v57 }
  0x7a   :  { %613 = vmatmul.msk.f32.gmra.mxu1 %vm100_vm0, %v51_v57  ;;  %v326_v57 = vld [vmem:[%s948_s1 + $0x78] sm:$0xff] }
  0x7e   :  { %v88_v7 = vpop.permute.xlu1 %87 }
  0x7f   :  { %v98_v6 = vpop.permute.xlu0 %97 }
  0x86   :  { %v83_v12 = vpop.permute.xlu1 %82 }
  0x87   :  { %v93_v11 = vpop.permute.xlu0 %92 }
  0x8e   :  { %v63_v37 = vpop.permute.xlu1 %62 }
  0x8f   :  { %v68_v32 = vpop.permute.xlu0 %67 }
  0xbe   :  { %v238_v58 = vpop.f32.mrf.mxu0 }
  0xbf   :  { %v279_v59 = vpop.f32.mrf.mxu1  ;;  %v239_v42 = vadd.f32 %v238_v58, %v63_v37 }
  0xc0   :  { %v280_v43 = vadd.f32 %v279_v59, %v63_v37 }
  0xc1   :  { %v303_v48 = vmax.f32 %v239_v42, 0.0 }
  0xc2   :  { %v304_v49 = vmax.f32 %v280_v43, 0.0 }
  0xc6   :  { %v241_v60 = vpop.f32.mrf.mxu0 }
  0xc7   :  { %v282_v61 = vpop.f32.mrf.mxu1  ;;  %v242_v38 = vadd.f32 %v241_v60, %v68_v32 }
  0xc8   :  { %v283_v39 = vadd.f32 %v282_v61, %v68_v32 }
  0xc9   :  { %v305_v46 = vmax.f32 %v242_v38, 0.0 }
  0xca   :  { %v306_v47 = vmax.f32 %v283_v39, 0.0 }
  0xce   :  { %v244_v62 = vpop.f32.mrf.mxu0 }
  0xcf   :  { %v285_v63 = vpop.f32.mrf.mxu1  ;;  %v245_v33 = vadd.f32 %v244_v62, %v73_v27 }
  0xd0   :  { %v286_v34 = vadd.f32 %v285_v63, %v73_v27 }
  0xd1   :  { %v307_v44 = vmax.f32 %v245_v33, 0.0 }
  0xd2   :  { %v308_v45 = vmax.f32 %v286_v34, 0.0 }
  0xd6   :  { %v247_v0 = vpop.f32.mrf.mxu0 }
  0xd7   :  { %v288_v1 = vpop.f32.mrf.mxu1  ;;  %v248_v28 = vadd.f32 %v247_v0, %v78_v10 }
  0xd8   :  { %v289_v29 = vadd.f32 %v288_v1, %v78_v10  ;;  %v363_v10 = vpop.permute.xlu1 %362 }
  0xd9   :  { %v309_v40 = vmax.f32 %v248_v28, 0.0 }
  0xda   :  { %v310_v41 = vmax.f32 %v289_v29, 0.0 }
  0xde   :  { %v250_v2 = vpop.f32.mrf.mxu0 }
  0xdf   :  { %v291_v3 = vpop.f32.mrf.mxu1  ;;  %v251_v23 = vadd.f32 %v250_v2, %v83_v12 }
  0xe0   :  { %v292_v24 = vadd.f32 %v291_v3, %v83_v12 }
  0xe1   :  { %v311_v35 = vmax.f32 %v251_v23, 0.0 }
  0xe2   :  { %v312_v36 = vmax.f32 %v292_v24, 0.0 }
  0xe6   :  { %v253_v4 = vpop.f32.mrf.mxu0 }
  0xe7   :  { %v294_v5 = vpop.f32.mrf.mxu1  ;;  %v254_v19 = vadd.f32 %v253_v4, %v88_v7 }
  0xe8   :  { %v295_v20 = vadd.f32 %v294_v5, %v88_v7  ;;  %v368_v7 = vpop.permute.xlu0 %367 }
  0xe9   :  { %v313_v30 = vmax.f32 %v254_v19, 0.0 }
  0xea   :  { %v314_v31 = vmax.f32 %v295_v20, 0.0 }
  0xee   :  { %v256_v8 = vpop.f32.mrf.mxu0 }
  0xef   :  { %v297_v9 = vpop.f32.mrf.mxu1  ;;  %v257_v15 = vadd.f32 %v256_v8, %v93_v11 }
  0xf0   :  { %v298_v16 = vadd.f32 %v297_v9, %v93_v11 }
  0xf1   :  { %v315_v25 = vmax.f32 %v257_v15, 0.0 }
  0xf2   :  { %v316_v26 = vmax.f32 %v298_v16, 0.0 }
  0xf6   :  { %v259_v13 = vpop.f32.mrf.mxu0 }
  0xf7   :  { %v300_v14 = vpop.f32.mrf.mxu1  ;;  %v260_v17 = vadd.f32 %v259_v13, %v98_v6 }
  0xf8   :  { %v301_v18 = vadd.f32 %v300_v14, %v98_v6  ;;  %v373_v6 = vpop.permute.xlu2 %372 }
  0xf9   :  { %v317_v21 = vmax.f32 %v260_v17, 0.0 }
  0xfa   :  { %v318_v22 = vmax.f32 %v301_v18, 0.0  ;;  %v353_v18 = vpop.permute.xlu0 %352 }
  0xfb   :  { %408 = vmatpush.msra.mxu2 %v317_v21 }
  0xfc   :  { %449 = vmatpush.msra.mxu3 %v318_v22 }
  0xfd   :  { %409 = vmatpush.msra.mxu2 %v315_v25 }
  0xfe   :  { %450 = vmatpush.msra.mxu3 %v316_v26 }
  0xff   :  { %410 = vmatpush.msra.mxu2 %v313_v30 }
 0x100   :  { %451 = vmatpush.msra.mxu3 %v314_v31  ;;  %v358_v11 = vpop.permute.xlu2 %357  ;;  %v348_v31 = vpop.permute.xlu1 %347 }
 0x101   :  { %411 = vmatpush.msra.mxu2 %v311_v35 }
 0x102   :  { %452 = vmatpush.msra.mxu3 %v312_v36 }
 0x103   :  { %412 = vmatpush.msra.mxu2 %v309_v40 }
 0x104   :  { %453 = vmatpush.msra.mxu3 %v310_v41  ;;  %v338_v41 = vpop.permute.xlu0 %337 }
 0x105   :  { %413 = vmatpush.msra.mxu2 %v307_v44 }
 0x106   :  { %454 = vmatpush.msra.mxu3 %v308_v45 }
 0x107   :  { %414 = vmatpush.msra.mxu2 %v305_v46 }
 0x108   :  { %455 = vmatpush.msra.mxu3 %v306_v47  ;;  %v343_v36 = vpop.permute.xlu2 %342 }
 0x109   :  { %415 = vmatpush.msra.mxu2 %v303_v48 }
 0x10a   :  { %456 = vmatpush.msra.mxu3 %v304_v49  ;;  %614 = vmatmul.msk.f32.vlgmr.msra.gmra.mxu2 %vm375_vm1, %v319_v50 }
 0x10b   :  { %622 = vmatmul.msk.f32.vlgmr.msra.gmra.mxu3 %vm375_vm1, %v319_v50  ;;  %v498_v50 = vld [vmem:[%s948_s1 + $0x80] sm:$0xff] }
 0x112   :  { %615 = vmatmul.msk.f32.gmra.mxu2 %vm375_vm1, %v320_v51 }
 0x113   :  { %623 = vmatmul.msk.f32.gmra.mxu3 %vm375_vm1, %v320_v51  ;;  %v503_v51 = vpop.permute.xlu1 %502 }
 0x11a   :  { %616 = vmatmul.msk.f32.gmra.mxu2 %vm375_vm1, %v321_v52 }
 0x11b   :  { %624 = vmatmul.msk.f32.gmra.mxu3 %vm375_vm1, %v321_v52 }
 0x122   :  { %617 = vmatmul.msk.f32.gmra.mxu2 %vm375_vm1, %v322_v53 }
 0x123   :  { %625 = vmatmul.msk.f32.gmra.mxu3 %vm375_vm1, %v322_v53 }
 0x12a   :  { %618 = vmatmul.msk.f32.gmra.mxu2 %vm375_vm1, %v323_v54 }
 0x12b   :  { %626 = vmatmul.msk.f32.gmra.mxu3 %vm375_vm1, %v323_v54 }
 0x132   :  { %619 = vmatmul.msk.f32.gmra.mxu2 %vm375_vm1, %v324_v55 }
 0x133   :  { %627 = vmatmul.msk.f32.gmra.mxu3 %vm375_vm1, %v324_v55 }
 0x13a   :  { %620 = vmatmul.msk.f32.gmra.mxu2 %vm375_vm1, %v325_v56 }
 0x13b   :  { %628 = vmatmul.msk.f32.gmra.mxu3 %vm375_vm1, %v325_v56 }
 0x142   :  { %621 = vmatmul.msk.f32.gmra.mxu2 %vm375_vm1, %v326_v57 }
 0x143   :  { %629 = vmatmul.msk.f32.gmra.mxu3 %vm375_vm1, %v326_v57 }
 0x18d   :  { %v417_v58 = vpop.f32.mrf.mxu2 }
 0x18e   :  { %v458_v59 = vpop.f32.mrf.mxu3  ;;  %v418_v42 = vadd.f32 %v417_v58, %v338_v41 }
 0x18f   :  { %v459_v43 = vadd.f32 %v458_v59, %v338_v41 }
 0x190   :  { %v482_v48 = vmax.f32 %v418_v42, 0.0 }
 0x191   :  { %v483_v49 = vmax.f32 %v459_v43, 0.0 }
 0x195   :  { %v420_v60 = vpop.f32.mrf.mxu2 }
 0x196   :  { %v461_v61 = vpop.f32.mrf.mxu3  ;;  %v421_v37 = vadd.f32 %v420_v60, %v343_v36 }
 0x197   :  { %v462_v38 = vadd.f32 %v461_v61, %v343_v36 }
 0x198   :  { %v484_v46 = vmax.f32 %v421_v37, 0.0 }
 0x199   :  { %v485_v47 = vmax.f32 %v462_v38, 0.0 }
 0x19d   :  { %v423_v62 = vpop.f32.mrf.mxu2 }
 0x19e   :  { %v464_v63 = vpop.f32.mrf.mxu3  ;;  %v424_v32 = vadd.f32 %v423_v62, %v348_v31 }
 0x19f   :  { %v465_v33 = vadd.f32 %v464_v63, %v348_v31 }
 0x1a0   :  { %v486_v44 = vmax.f32 %v424_v32, 0.0 }
 0x1a1   :  { %v487_v45 = vmax.f32 %v465_v33, 0.0 }
 0x1a5   :  { %v426_v0 = vpop.f32.mrf.mxu2 }
 0x1a6   :  { %v467_v1 = vpop.f32.mrf.mxu3  ;;  %v427_v27 = vadd.f32 %v426_v0, %v353_v18 }
 0x1a7   :  { %v468_v28 = vadd.f32 %v467_v1, %v353_v18 }
 0x1a8   :  { %v488_v39 = vmax.f32 %v427_v27, 0.0 }
 0x1a9   :  { %v489_v40 = vmax.f32 %v468_v28, 0.0 }
 0x1ad   :  { %v429_v2 = vpop.f32.mrf.mxu2 }
 0x1ae   :  { %v470_v3 = vpop.f32.mrf.mxu3  ;;  %v430_v23 = vadd.f32 %v429_v2, %v358_v11 }
 0x1af   :  { %v471_v24 = vadd.f32 %v470_v3, %v358_v11 }
 0x1b0   :  { %v490_v34 = vmax.f32 %v430_v23, 0.0 }
 0x1b1   :  { %v491_v35 = vmax.f32 %v471_v24, 0.0 }
 0x1b5   :  { %v432_v4 = vpop.f32.mrf.mxu2 }
 0x1b6   :  { %v473_v5 = vpop.f32.mrf.mxu3  ;;  %v433_v19 = vadd.f32 %v432_v4, %v363_v10 }
 0x1b7   :  { %v474_v20 = vadd.f32 %v473_v5, %v363_v10 }
 0x1b8   :  { %v492_v29 = vmax.f32 %v433_v19, 0.0 }
 0x1b9   :  { %v493_v30 = vmax.f32 %v474_v20, 0.0 }
 0x1bd   :  { %v435_v8 = vpop.f32.mrf.mxu2 }
 0x1be   :  { %v476_v9 = vpop.f32.mrf.mxu3  ;;  %v436_v14 = vadd.f32 %v435_v8, %v368_v7 }
 0x1bf   :  { %v477_v15 = vadd.f32 %v476_v9, %v368_v7 }
 0x1c0   :  { %v494_v25 = vmax.f32 %v436_v14, 0.0 }
 0x1c1   :  { %v495_v26 = vmax.f32 %v477_v15, 0.0 }
 0x1c5   :  { %v438_v12 = vpop.f32.mrf.mxu2 }
 0x1c6   :  { %v479_v13 = vpop.f32.mrf.mxu3  ;;  %v439_v16 = vadd.f32 %v438_v12, %v373_v6 }
 0x1c7   :  { %v480_v17 = vadd.f32 %v479_v13, %v373_v6 }
 0x1c8   :  { %v496_v21 = vmax.f32 %v439_v16, 0.0 }
 0x1c9   :  { %v497_v22 = vmax.f32 %v480_v17, 0.0 }
 0x1ca   :  { %516 = vmatpush.msrb.mxu2 %v496_v21 }
 0x1cb   :  { %536 = vmatpush.msrb.mxu3 %v497_v22 }
 0x1cc   :  { %517 = vmatpush.msrb.mxu2 %v494_v25 }
 0x1cd   :  { %537 = vmatpush.msrb.mxu3 %v495_v26 }
 0x1ce   :  { %518 = vmatpush.msrb.mxu2 %v492_v29 }
 0x1cf   :  { %538 = vmatpush.msrb.mxu3 %v493_v30 }
 0x1d0   :  { %519 = vmatpush.msrb.mxu2 %v490_v34 }
 0x1d1   :  { %539 = vmatpush.msrb.mxu3 %v491_v35 }
 0x1d2   :  { %520 = vmatpush.msrb.mxu2 %v488_v39 }
 0x1d3   :  { %540 = vmatpush.msrb.mxu3 %v489_v40 }
 0x1d4   :  { %521 = vmatpush.msrb.mxu2 %v486_v44 }
 0x1d5   :  { %541 = vmatpush.msrb.mxu3 %v487_v45 }
 0x1d6   :  { %522 = vmatpush.msrb.mxu2 %v484_v46 }
 0x1d7   :  { %542 = vmatpush.msrb.mxu3 %v485_v47 }
 0x1d8   :  { %523 = vmatpush.msrb.mxu2 %v482_v48 }
 0x1d9   :  { %543 = vmatpush.msrb.mxu3 %v483_v49  ;;  %630 = vmatmul.msk.f32.vlgmr.msrb.gmra.mxu2 %vm375_vm1, %v498_v50 }
 0x1da   :  { %631 = vmatmul.msk.f32.vlgmr.msrb.gmra.mxu3 %vm375_vm1, %v498_v50 }
 0x25c   :  { %v525_v52 = vpop.f32.mrf.mxu2 }
 0x25d   :  { %v545_v53 = vpop.f32.mrf.mxu3  ;;  %v526_v54 = vadd.f32 %v525_v52, %v503_v51 }
 0x25e   :  { %v546_v55 = vadd.f32 %v545_v53, %v503_v51 }
 0x25f   :  { %548 = vst [vmem:[#allocation2] sm:$0xff] %v526_v54 }
 0x260   :  { %549 = vst [vmem:[#allocation2 + $0x8] sm:$0xff] %v546_v55 }
 0x261   :  { %560 = dma.vmem_to_hbm [thread:$0]  %s556_s28, 256, %s558_s3, [#allocation3]  }
 0x262   :  { %661 = dma.done.wait [#allocation3], 256  }
 0x263   :  { %662 = vsyncadd [#allocation3], 4294967040 }
 0x264   :  { %565 = vsyncpa [#allocation3], 1 }

</bundles_post_ra>
